<compile_context>
chip_gen: v7x
topology: tpu7x:2x2x1
jax: 0.10.0
libtpu: 0.0.40
codegen_flags: <defaults>
</compile_context>

<pallas_src>
import functools

import jax
import jax.numpy as jnp
from jax.experimental import pallas as pl
from jax.experimental.pallas import tpu as pltpu


def _net_kernel(x_ref, w_ref, b_ref, out_ref, *, n_out):
    # x_ref : (bb, D)    zero-padded input features
    # w_ref : (5, D, D)  packed weights, (in, out) layout, zero padded
    # b_ref : (5, D)     packed biases (always f32), zero padded
    # out_ref: (bb, D)   lane-dense output slab; cols >= n_out are written 0
    wdt = w_ref.dtype
    h = x_ref[...].astype(wdt)
    for i in range(4):  # fc1..fc4: Linear + ReLU (MXU matmul, f32 accumulation)
        z = jnp.dot(h, w_ref[i], preferred_element_type=jnp.float32) \
            + b_ref[i:i + 1, :]
        h = jnp.maximum(z, 0.0).astype(wdt)

    # Fused dueling head: columns [0, n_out) = advantage, column n_out = value,
    # columns > n_out are exactly zero (zero-padded weights + biases).
    y = jnp.dot(h, w_ref[4], preferred_element_type=jnp.float32) \
        + b_ref[4:5, :]                                          # (bb, D) f32

    lane = jax.lax.broadcasted_iota(jnp.int32, y.shape, 1)       # (bb, D)
    adv_mask = lane < n_out
    # Mean over the TRUE action columns only (padding excluded), via a masked
    # full-width lane reduce (XLU) -- no (bb, 8) / (bb, 1) slice intermediates.
    adv_sum = jnp.sum(jnp.where(adv_mask, y, 0.0), axis=-1, keepdims=True)
    # Value column extracted with a masked reduce (broadcasts back over lanes).
    val = jnp.sum(jnp.where(lane == n_out, y, 0.0), axis=-1, keepdims=True)

    q = y + val - adv_sum * (1.0 / float(n_out))
    out_ref[...] = jnp.where(adv_mask, q, 0.0).astype(out_ref.dtype)


def _round_up(v, m):
    return (v + m - 1) // m * m


def pack_params(p, *, use_bf16=False):
    """Fuse adv/val heads and pack all layers into one weight/bias stack."""
    w_head = jnp.concatenate([p["wadv"], p["wv"]], axis=1)   # (n_mid4, n_out+1)
    b_head = jnp.concatenate([p["badv"], p["bv"]], axis=1)   # (1, n_out+1)
    ws = [p["w1"], p["w2"], p["w3"], p["w4"], w_head]
    bs = [p["b1"], p["b2"], p["b3"], p["b4"], b_head]

    d = max(max(w.shape[0], w.shape[1]) for w in ws)
    d = _round_up(d, 128)  # lane-dense width; 128 is optimal (true widths <= 64)

    w_stack = jnp.stack(
        [jnp.pad(w, ((0, d - w.shape[0]), (0, d - w.shape[1]))) for w in ws])
    b_stack = jnp.concatenate(
        [jnp.pad(b, ((0, 0), (0, d - b.shape[1]))) for b in bs], axis=0)
    wdt = jnp.bfloat16 if use_bf16 else jnp.float32
    return w_stack.astype(wdt), b_stack.astype(jnp.float32)


def _pick_bb(B, batch_block):
    if B <= batch_block:
        return B  # single block; block_shape == full dim satisfies tiling rules
    # Guarantee >= 2 grid steps (v7x: 2 TCs/chip) and keep them balanced.
    half = _round_up((B + 1) // 2, 8)
    return min(batch_block, half)


def net_forward(x, w_stack, b_stack, n_out, *, batch_block=512):
    """x: (B, n_in); w_stack: (5, D, D); b_stack: (5, D). Returns (B, n_out)."""
    B = x.shape[0]
    d = w_stack.shape[1]
    # Zero-pad features to the packed width (exact: padded weight rows are 0).
    x = jnp.pad(x.astype(jnp.float32), ((0, 0), (0, d - x.shape[1])))

    bb = _pick_bb(B, batch_block)
    grid = (pl.cdiv(B, bb),)   # partial last block handled by Pallas masking

    cost = pl.CostEstimate(
        flops=int(2 * B * 5 * d * d),
        transcendentals=0,
        bytes_accessed=int(4 * (x.size + b_stack.size + B * d)
                           + w_stack.dtype.itemsize * w_stack.size),
    )

    kernel = functools.partial(_net_kernel, n_out=n_out)
    # NOTE: at D=128 total VMEM (x/out double-buffered + weight stack) is
    # < 2 MiB, well under every chip's scoped limit.  If D is ever scaled to
    # >= 1024, switch the w/b specs to pipeline_mode=pl.Buffered(1) (their
    # block index is constant) or raise vmem_limit_bytes before doing so.
    out = pl.pallas_call(
        kernel,
        out_shape=jax.ShapeDtypeStruct((B, d), jnp.float32),     # lane-dense slab
        grid=grid,
        in_specs=[
            pl.BlockSpec((bb, d), lambda i: (i, 0)),             # batch-sharded x
            pl.BlockSpec(w_stack.shape, lambda i: (0, 0, 0)),    # replicated weights
            pl.BlockSpec(b_stack.shape, lambda i: (0, 0)),       # replicated biases
        ],
        out_specs=pl.BlockSpec((bb, d), lambda i: (i, 0)),
        compiler_params=pltpu.CompilerParams(
            dimension_semantics=("parallel",)),
        cost_estimate=cost,
    )(x, w_stack, b_stack)
    return out[:, :n_out]


def init_params(key, n_in, n_mid1, n_mid2, n_mid3, n_mid4, n_out):
    """Deterministic synthetic init (PyTorch-Linear-like uniform fan-in)."""
    dims = [(n_in, n_mid1), (n_mid1, n_mid2), (n_mid2, n_mid3),
            (n_mid3, n_mid4), (n_mid4, n_out), (n_mid4, 1)]
    names = ["1", "2", "3", "4", "adv", "v"]
    params = {}
    for (fan_in, fan_out), name in zip(dims, names):
        key, kw, kb = jax.random.split(key, 3)
        bound = 1.0 / jnp.sqrt(jnp.float32(fan_in))
        # stored directly as (in, out) -- i.e. already W.T relative to PyTorch.
        params["w" + name] = jax.random.uniform(
            kw, (fan_in, fan_out), jnp.float32, -bound, bound)
        params["b" + name] = jax.random.uniform(
            kb, (1, fan_out), jnp.float32, -bound, bound)
    return params


def net_forward_ref(x, p):
    """Pure-JAX reference of the same forward pass (for sanity checking)."""
    h = x
    for name in ["1", "2", "3", "4"]:
        h = jnp.maximum(h @ p["w" + name] + p["b" + name], 0.0)
    adv = h @ p["wadv"] + p["badv"]
    val = h @ p["wv"] + p["bv"]
    return val + adv - jnp.mean(adv, axis=1, keepdims=True)


if __name__ == "__main__":
    # Small DQN-style sizes.  NOTE: at B=8 this is launch/DMA-latency bound;
    # for per-env-step RL inference, batch multiple states per call (or keep
    # weights resident across calls) rather than tuning the MXU path.
    B, n_in, n_mid1, n_mid2, n_mid3, n_mid4, n_out = 8, 32, 64, 64, 48, 32, 8

    key = jax.random.PRNGKey(0)
    key, kx = jax.random.split(key)
    x = jax.random.normal(kx, (B, n_in), jnp.float32)

    params = init_params(key, n_in, n_mid1, n_mid2, n_mid3, n_mid4, n_out)
    # Default f32 path (matches PyTorch semantics); pass use_bf16=True for the
    # bf16-weight / f32-accumulate MXU fast path (loosen tolerance to ~2e-2).
    w_stack, b_stack = pack_params(params, use_bf16=False)

    out = net_forward(x, w_stack, b_stack, n_out)
    out = jax.block_until_ready(out)

    ref = net_forward_ref(x, params)
    assert out.shape == (B, n_out)
    assert jnp.allclose(out, ref, atol=1e-4, rtol=1e-4), (
        float(jnp.max(jnp.abs(out - ref))))

    print("KERNEL_OK")
</pallas_src>

<mosaic_0001>
module attributes {stable_mosaic.version = 11 : i64} {
  func.func @_net_kernel(%arg0: i32, %arg1: memref<8x128xf32, #tpu.memory_space<vmem>>, %arg2: memref<5x128x128xf32, #tpu.memory_space<vmem>>, %arg3: memref<5x128xf32, #tpu.memory_space<vmem>>, %arg4: memref<8x128xf32, #tpu.memory_space<vmem>>) attributes {dimension_semantics = [#tpu.dimension_semantics<parallel>], iteration_bounds = array<i64: 1>, scalar_prefetch = 0 : i64, scratch_operands = 0 : i64, tpu.core_type = #tpu.core_type<tc>, window_params = [{transform_indices = @transform_0, window_bounds = array<i64: 8, 128>}, {pipeline_mode = #tpu.pipeline_mode<synchronous>, transform_indices = @transform_1, window_bounds = array<i64: 5, 128, 128>}, {pipeline_mode = #tpu.pipeline_mode<synchronous>, transform_indices = @transform_2, window_bounds = array<i64: 5, 128>}, {transform_indices = @transform_3, window_bounds = array<i64: 8, 128>}]} {
    %c0 = arith.constant 0 : index
    %c0_0 = arith.constant 0 : index
    %0 = vector.load %arg1[%c0, %c0_0] : memref<8x128xf32, #tpu.memory_space<vmem>>, vector<8x128xf32>
    %c0_1 = arith.constant 0 : index
    %c0_2 = arith.constant 0 : index
    %c0_3 = arith.constant 0 : index
    %1 = vector.load %arg2[%c0_1, %c0_2, %c0_3] : memref<5x128x128xf32, #tpu.memory_space<vmem>>, vector<1x128x128xf32>
    %2 = vector.shape_cast %1 : vector<1x128x128xf32> to vector<128x128xf32>
    %cst = arith.constant dense<0.000000e+00> : vector<8x128xf32>
    %3 = tpu.matmul %0, %2, %cst {dimension_numbers = #tpu.dot_dimension_numbers<[1], [0], [0], [1], [0, 0, 1, 1], [], []>} : vector<8x128xf32>, vector<128x128xf32>, vector<8x128xf32> -> vector<8x128xf32>
    %c0_4 = arith.constant 0 : index
    %c0_5 = arith.constant 0 : index
    %4 = vector.load %arg3[%c0_4, %c0_5] : memref<5x128xf32, #tpu.memory_space<vmem>>, vector<1x128xf32>
    %5 = vector.broadcast %4 : vector<1x128xf32> to vector<8x128xf32>
    %6 = arith.addf %3, %5 : vector<8x128xf32>
    %cst_6 = arith.constant 0.000000e+00 : f32
    %7 = vector.broadcast %cst_6 : f32 to vector<8x128xf32>
    %8 = arith.maximumf %6, %7 : vector<8x128xf32>
    %c1 = arith.constant 1 : index
    %c0_7 = arith.constant 0 : index
    %c0_8 = arith.constant 0 : index
    %9 = vector.load %arg2[%c1, %c0_7, %c0_8] : memref<5x128x128xf32, #tpu.memory_space<vmem>>, vector<1x128x128xf32>
    %10 = vector.shape_cast %9 : vector<1x128x128xf32> to vector<128x128xf32>
    %cst_9 = arith.constant dense<0.000000e+00> : vector<8x128xf32>
    %11 = tpu.matmul %8, %10, %cst_9 {dimension_numbers = #tpu.dot_dimension_numbers<[1], [0], [0], [1], [0, 0, 1, 1], [], []>} : vector<8x128xf32>, vector<128x128xf32>, vector<8x128xf32> -> vector<8x128xf32>
    %c1_10 = arith.constant 1 : index
    %c0_11 = arith.constant 0 : index
    %12 = vector.load %arg3[%c1_10, %c0_11] : memref<5x128xf32, #tpu.memory_space<vmem>>, vector<1x128xf32>
    %13 = vector.broadcast %12 : vector<1x128xf32> to vector<8x128xf32>
    %14 = arith.addf %11, %13 : vector<8x128xf32>
    %cst_12 = arith.constant 0.000000e+00 : f32
    %15 = vector.broadcast %cst_12 : f32 to vector<8x128xf32>
    %16 = arith.maximumf %14, %15 : vector<8x128xf32>
    %c2 = arith.constant 2 : index
    %c0_13 = arith.constant 0 : index
    %c0_14 = arith.constant 0 : index
    %17 = vector.load %arg2[%c2, %c0_13, %c0_14] : memref<5x128x128xf32, #tpu.memory_space<vmem>>, vector<1x128x128xf32>
    %18 = vector.shape_cast %17 : vector<1x128x128xf32> to vector<128x128xf32>
    %cst_15 = arith.constant dense<0.000000e+00> : vector<8x128xf32>
    %19 = tpu.matmul %16, %18, %cst_15 {dimension_numbers = #tpu.dot_dimension_numbers<[1], [0], [0], [1], [0, 0, 1, 1], [], []>} : vector<8x128xf32>, vector<128x128xf32>, vector<8x128xf32> -> vector<8x128xf32>
    %c2_16 = arith.constant 2 : index
    %c0_17 = arith.constant 0 : index
    %20 = vector.load %arg3[%c2_16, %c0_17] : memref<5x128xf32, #tpu.memory_space<vmem>>, vector<1x128xf32>
    %21 = vector.broadcast %20 : vector<1x128xf32> to vector<8x128xf32>
    %22 = arith.addf %19, %21 : vector<8x128xf32>
    %cst_18 = arith.constant 0.000000e+00 : f32
    %23 = vector.broadcast %cst_18 : f32 to vector<8x128xf32>
    %24 = arith.maximumf %22, %23 : vector<8x128xf32>
    %c3 = arith.constant 3 : index
    %c0_19 = arith.constant 0 : index
    %c0_20 = arith.constant 0 : index
    %25 = vector.load %arg2[%c3, %c0_19, %c0_20] : memref<5x128x128xf32, #tpu.memory_space<vmem>>, vector<1x128x128xf32>
    %26 = vector.shape_cast %25 : vector<1x128x128xf32> to vector<128x128xf32>
    %cst_21 = arith.constant dense<0.000000e+00> : vector<8x128xf32>
    %27 = tpu.matmul %24, %26, %cst_21 {dimension_numbers = #tpu.dot_dimension_numbers<[1], [0], [0], [1], [0, 0, 1, 1], [], []>} : vector<8x128xf32>, vector<128x128xf32>, vector<8x128xf32> -> vector<8x128xf32>
    %c3_22 = arith.constant 3 : index
    %c0_23 = arith.constant 0 : index
    %28 = vector.load %arg3[%c3_22, %c0_23] : memref<5x128xf32, #tpu.memory_space<vmem>>, vector<1x128xf32>
    %29 = vector.broadcast %28 : vector<1x128xf32> to vector<8x128xf32>
    %30 = arith.addf %27, %29 : vector<8x128xf32>
    %cst_24 = arith.constant 0.000000e+00 : f32
    %31 = vector.broadcast %cst_24 : f32 to vector<8x128xf32>
    %32 = arith.maximumf %30, %31 : vector<8x128xf32>
    %c4 = arith.constant 4 : index
    %c0_25 = arith.constant 0 : index
    %c0_26 = arith.constant 0 : index
    %33 = vector.load %arg2[%c4, %c0_25, %c0_26] : memref<5x128x128xf32, #tpu.memory_space<vmem>>, vector<1x128x128xf32>
    %34 = vector.shape_cast %33 : vector<1x128x128xf32> to vector<128x128xf32>
    %cst_27 = arith.constant dense<0.000000e+00> : vector<8x128xf32>
    %35 = tpu.matmul %32, %34, %cst_27 {dimension_numbers = #tpu.dot_dimension_numbers<[1], [0], [0], [1], [0, 0, 1, 1], [], []>} : vector<8x128xf32>, vector<128x128xf32>, vector<8x128xf32> -> vector<8x128xf32>
    %c4_28 = arith.constant 4 : index
    %c0_29 = arith.constant 0 : index
    %36 = vector.load %arg3[%c4_28, %c0_29] : memref<5x128xf32, #tpu.memory_space<vmem>>, vector<1x128xf32>
    %37 = vector.broadcast %36 : vector<1x128xf32> to vector<8x128xf32>
    %38 = arith.addf %35, %37 : vector<8x128xf32>
    %39 = tpu.iota {dimensions = array<i32: 1>} : vector<8x128xi32>
    %c8_i32 = arith.constant 8 : i32
    %40 = vector.broadcast %c8_i32 : i32 to vector<8x128xi32>
    %41 = arith.cmpi slt, %39, %40 : vector<8x128xi32>
    %cst_30 = arith.constant 0.000000e+00 : f32
    %42 = vector.broadcast %cst_30 : f32 to vector<8x128xf32>
    %43 = arith.select %41, %38, %42 : vector<8x128xi1>, vector<8x128xf32>
    %cst_31 = arith.constant dense<0.000000e+00> : vector<8xf32>
    %44 = vector.multi_reduction <add>, %43, %cst_31 [1] : vector<8x128xf32> to vector<8xf32>
    %45 = vector.shape_cast %44 : vector<8xf32> to vector<8x1xf32>
    %c8_i32_32 = arith.constant 8 : i32
    %46 = vector.broadcast %c8_i32_32 : i32 to vector<8x128xi32>
    %47 = arith.cmpi eq, %39, %46 : vector<8x128xi32>
    %cst_33 = arith.constant 0.000000e+00 : f32
    %48 = vector.broadcast %cst_33 : f32 to vector<8x128xf32>
    %49 = arith.select %47, %38, %48 : vector<8x128xi1>, vector<8x128xf32>
    %cst_34 = arith.constant dense<0.000000e+00> : vector<8xf32>
    %50 = vector.multi_reduction <add>, %49, %cst_34 [1] : vector<8x128xf32> to vector<8xf32>
    %51 = vector.shape_cast %50 : vector<8xf32> to vector<8x1xf32>
    %52 = vector.broadcast %51 : vector<8x1xf32> to vector<8x128xf32>
    %53 = arith.addf %38, %52 : vector<8x128xf32>
    %cst_35 = arith.constant 1.250000e-01 : f32
    %54 = vector.broadcast %cst_35 : f32 to vector<8x1xf32>
    %55 = arith.mulf %45, %54 : vector<8x1xf32>
    %56 = vector.broadcast %55 : vector<8x1xf32> to vector<8x128xf32>
    %57 = arith.subf %53, %56 : vector<8x128xf32>
    %cst_36 = arith.constant 0.000000e+00 : f32
    %58 = vector.broadcast %cst_36 : f32 to vector<8x128xf32>
    %59 = arith.select %41, %57, %58 : vector<8x128xi1>, vector<8x128xf32>
    %c0_37 = arith.constant 0 : index
    %c0_38 = arith.constant 0 : index
    %60 = vector.load %arg4[%c0_37, %c0_38] : memref<8x128xf32, #tpu.memory_space<vmem>>, vector<8x128xf32>
    tpu.vector_store %arg4[%c0_37, %c0_38], %59 {strides = array<i32>} : memref<8x128xf32, #tpu.memory_space<vmem>>, vector<8x128xf32>,
    return
  }
  func.func @transform_0(%arg0: i32) -> (i32, i32) {
    %c0_i32 = arith.constant 0 : i32
    %c0_i32_0 = arith.constant 0 : i32
    return %arg0, %c0_i32 : i32, i32
  }
  func.func @transform_1(%arg0: i32) -> (i32, i32, i32) {
    %c0_i32 = arith.constant 0 : i32
    %c0_i32_0 = arith.constant 0 : i32
    %c0_i32_1 = arith.constant 0 : i32
    %c0_i32_2 = arith.constant 0 : i32
    return %c0_i32, %c0_i32_0, %c0_i32_1 : i32, i32, i32
  }
  func.func @transform_2(%arg0: i32) -> (i32, i32) {
    %c0_i32 = arith.constant 0 : i32
    %c0_i32_0 = arith.constant 0 : i32
    %c0_i32_1 = arith.constant 0 : i32
    return %c0_i32, %c0_i32_0 : i32, i32
  }
  func.func @transform_3(%arg0: i32) -> (i32, i32) {
    %c0_i32 = arith.constant 0 : i32
    %c0_i32_0 = arith.constant 0 : i32
    return %arg0, %c0_i32 : i32, i32
  }
}

</mosaic_0001>

<bundles_post_ra>
// kernel: tpu_custom_call.1
= control target key start
LH: loop header
LB: loop body
LE: loop exit
PB: predicated region body
PF: predicated region fallthrough
CT: control target
= control target key end

     0   :  { %8 = vsyncpa [#allocation3], 0  ;;  %s1164_s0 = inlined_call_operand.hbm [shape: f32[8,128], index: 0, kind: input, shape index: {}]   ;;  %s1165_s1 = inlined_call_operand.hbm [shape: f32[5,128,128], index: 1, kind: input, shape index: {}]   ;;  %s1166_s2 = inlined_call_operand.hbm [shape: f32[5,128], index: 2, kind: input, shape index: {}]   ;;  %s1167_s3 = inlined_call_operand.hbm [shape: f32[8,128], index: 3, kind: output, shape index: {}]  }
   0x1   :  { %9 = vsyncpa [#allocation6], 0 }
   0x2   :  { %10 = vsyncpa [#allocation4], 0  ;;  %s1035_s12 = smov [#allocation5]   ;;  %s941_s16 = scalar_lea.hbm %s1165_s1, 10240 }
   0x3   :  { %s26_s13 = sshll.u32 %s1035_s12, 4  ;;  %p942_p0 = scmp.ne.s32.totalorder %s1165_s1, %s941_s16  ;;  %s27_s13 = int_to_ptr.vmem [resolvable:$true] %s26_s13 }
   0x4   :  { %p945_p1 = scmp.lt.u32.totalorder %s941_s16, %s1165_s1 }
   0x6   :  { %p947_p2 = pnand %p945_p1, %p942_p0 }
   0x8   :  { %950 = shalt.err (!%p947_p2)
}
   0x9   :  { %s951_s21 = scalar_lea.vmem %s27_s13, 10240  ;;  %p956_p4 = scmp.lt.s32.totalorder %s27_s13, %s27_s13 }
   0xa   :  { %p952_p3 = scmp.ne.s32.totalorder %s27_s13, %s951_s21  ;;  %p957_p5 = scmp.lt.s32.totalorder %s951_s21, %s951_s21 }
   0xc   :  { %p958_p6 = por %p957_p5, %p956_p4 }
   0xe   :  { %p959_p7 = pnand %p958_p6, %p952_p3 }
  0x10   :  { %962 = shalt.err (!%p959_p7)
}
  0x11   :  { %s1036_s22 = smov 128   ;;  %s1037_s23 = smov 8  }
  0x12   :  { %32 = dma.hbm_to_vmem [thread:$0]  %s1165_s1, 10240, %s27_s13, [#allocation6], %s1036_s22, %s1036_s22, %s1037_s23  }
  0x13   :  { %s1038_s26 = smov [#allocation2]   ;;  %s1039_s28 = smov [#allocation7]  }
  0x14   :  { %s17_s27 = sshll.u32 %s1038_s26, 4  ;;  %s39_s29 = sshll.u32 %s1039_s28, 4  ;;  %s18_s27 = int_to_ptr.vmem [resolvable:$true] %s17_s27  ;;  %s40_s29 = int_to_ptr.vmem [resolvable:$true] %s39_s29 }
  0x15   :  { %s963_s5 = scalar_lea.hbm %s1164_s0, 128 }
  0x16   :  { %p964_p8 = scmp.ne.s32.totalorder %s1164_s0, %s963_s5  ;;  %p967_p9 = scmp.lt.u32.totalorder %s963_s5, %s1164_s0 }
  0x18   :  { %p969_p10 = pnand %p967_p9, %p964_p8 }
  0x1a   :  { %972 = shalt.err (!%p969_p10)
}
  0x1b   :  { %s973_s1 = scalar_lea.vmem %s18_s27, 128  ;;  %p978_p12 = scmp.lt.s32.totalorder %s18_s27, %s18_s27 }
  0x1c   :  { %p974_p11 = scmp.ne.s32.totalorder %s18_s27, %s973_s1  ;;  %p979_p13 = scmp.lt.s32.totalorder %s973_s1, %s973_s1 }
  0x1e   :  { %p980_p0 = por %p979_p13, %p978_p12 }
  0x20   :  { %p981_p1 = pnand %p980_p0, %p974_p11 }
  0x22   :  { %984 = shalt.err (!%p981_p1)
}
  0x23   :  { %20 = dma.hbm_to_vmem [thread:$0]  %s1164_s0, 128, %s18_s27, [#allocation3]  }
  0x24   :  { %s985_s14 = scalar_lea.hbm %s1166_s2, 128 }
  0x25   :  { %p986_p2 = scmp.ne.s32.totalorder %s1166_s2, %s985_s14  ;;  %p989_p3 = scmp.lt.u32.totalorder %s985_s14, %s1166_s2 }
  0x27   :  { %p991_p4 = pnand %p989_p3, %p986_p2 }
  0x29   :  { %994 = shalt.err (!%p991_p4)
}
  0x2a   :  { %s995_s19 = scalar_lea.vmem %s40_s29, 128  ;;  %p1000_p6 = scmp.lt.s32.totalorder %s40_s29, %s40_s29 }
  0x2b   :  { %p996_p5 = scmp.ne.s32.totalorder %s40_s29, %s995_s19  ;;  %p1001_p7 = scmp.lt.s32.totalorder %s995_s19, %s995_s19 }
  0x2d   :  { %p1002_p8 = por %p1001_p7, %p1000_p6 }
  0x2f   :  { %p1003_p9 = pnand %p1002_p8, %p996_p5 }
  0x31   :  { %1006 = shalt.err (!%p1003_p9)
}
  0x32   :  { %42 = dma.hbm_to_vmem [thread:$0]  %s1166_s2, 128, %s40_s29, [#allocation6]  }
  0x33   :  { %1029 = dma.done.wait [#allocation3], 128  }
  0x34   :  { %1030 = vsyncadd [#allocation3], 4294967168 }
  0x35   :  { %1031 = dma.done.wait [#allocation6], 10368  }
  0x36   :  { %1032 = vsyncadd [#allocation6], 4294956928  ;;  %v1040_v0 = vmov 0.0|0.0   ;;  %vm1041_vm0 = vmmov 0   ;;  %v1042_v1 = vmov 0.0   ;;  %v53_v2 = vld [vmem:[#allocation5] sm:$0xff] }
  0x37   :  { %812 = vmatprep.subr.bf16.mxu0 %v1040_v0  ;;  %669 = vmatprep.mubr.msk.f32.mxu0 %vm1041_vm0, %v1042_v1  ;;  %v54_v3 = vld [vmem:[#allocation5 + $0x8] sm:$0xff]  ;;  %v55_v4 = vld [vmem:[#allocation5 + $0x10] sm:$0xff]  ;;  %v56_v6 = vld [vmem:[#allocation5 + $0x18] sm:$0xff]  ;;  %s1043_s2 = smov [#allocation8]  }
  0x38   :  { %836 = vmatprep.subr.bf16.mxu1 %v1040_v0  ;;  %704 = vmatprep.mubr.msk.f32.mxu1 %vm1041_vm0, %v1042_v1  ;;  %v813_v5 = vpack.c.bf16 %v54_v3, %v53_v2  ;;  %v816_v7 = vpack.c.bf16 %v56_v6, %v55_v4  ;;  %v57_v8 = vld [vmem:[#allocation5 + $0x20] sm:$0xff]  ;;  %v58_v9 = vld [vmem:[#allocation5 + $0x28] sm:$0xff]  ;;  %v148_v12 = vld [vmem:[#allocation5 + $0x90] sm:$0xff]  ;;  %s537_s21 = sshll.u32 %s1043_s2, 4  ;;  %s538_s21 = int_to_ptr.vmem [resolvable:$true] %s537_s21 }
  0x39   :  { %v146_v10 = vld [vmem:[#allocation5 + $0x80] sm:$0xff]  ;;  %v147_v11 = vld [vmem:[#allocation5 + $0x88] sm:$0xff]  ;;  %v149_v13 = vld [vmem:[#allocation5 + $0x98] sm:$0xff]  ;;  %v819_v14 = vpack.c.bf16 %v58_v9, %v57_v8  ;;  %s1007_s22 = scalar_lea.vmem %s538_s21, 128  ;;  %p1012_p11 = scmp.lt.s32.totalorder %s538_s21, %s538_s21 }
  0x3a   :  { %814 = vmatpush3.bf16.msra.mxu0 %v813_v5  ;;  %v837_v15 = vpack.c.bf16 %v147_v11, %v146_v10  ;;  %v59_v16 = vld [vmem:[#allocation5 + $0x30] sm:$0xff]  ;;  %v60_v17 = vld [vmem:[#allocation5 + $0x38] sm:$0xff]  ;;  %v840_v18 = vpack.c.bf16 %v149_v13, %v148_v12  ;;  %v150_v19 = vld [vmem:[#allocation5 + $0xa0] sm:$0xff]  ;;  %p1008_p10 = scmp.ne.s32.totalorder %s538_s21, %s1007_s22  ;;  %p1013_p12 = scmp.lt.s32.totalorder %s1007_s22, %s1007_s22 }
  0x3b   :  { %815 = vmatprep.subr.bf16.mxu0 %v1040_v0  ;;  %v151_v20 = vld [vmem:[#allocation5 + $0xa8] sm:$0xff]  ;;  %v822_v21 = vpack.c.bf16 %v60_v17, %v59_v16  ;;  %v61_v22 = vld [vmem:[#allocation5 + $0x40] sm:$0xff]  ;;  %v152_v25 = vld [vmem:[#allocation5 + $0xb0] sm:$0xff] }
  0x3c   :  { %838 = vmatpush3.bf16.msra.mxu1 %v837_v15  ;;  %v62_v23 = vld [vmem:[#allocation5 + $0x48] sm:$0xff]  ;;  %v843_v24 = vpack.c.bf16 %v151_v20, %v150_v19  ;;  %v153_v26 = vld [vmem:[#allocation5 + $0xb8] sm:$0xff]  ;;  %v63_v28 = vld [vmem:[#allocation5 + $0x50] sm:$0xff]  ;;  %p1014_p13 = por %p1013_p12, %p1012_p11 }
  0x3d   :  { %839 = vmatprep.subr.bf16.mxu1 %v1040_v0  ;;  %v825_v27 = vpack.c.bf16 %v62_v23, %v61_v22  ;;  %v64_v29 = vld [vmem:[#allocation5 + $0x58] sm:$0xff]  ;;  %v846_v30 = vpack.c.bf16 %v153_v26, %v152_v25  ;;  %v154_v31 = vld [vmem:[#allocation5 + $0xc0] sm:$0xff]  ;;  %v155_v32 = vld [vmem:[#allocation5 + $0xc8] sm:$0xff] }
  0x3e   :  { %817 = vmatpush3.bf16.msra.mxu0 %v816_v7  ;;  %v828_v33 = vpack.c.bf16 %v64_v29, %v63_v28  ;;  %v65_v34 = vld [vmem:[#allocation5 + $0x60] sm:$0xff]  ;;  %v66_v35 = vld [vmem:[#allocation5 + $0x68] sm:$0xff]  ;;  %v849_v36 = vpack.c.bf16 %v155_v32, %v154_v31  ;;  %v156_v37 = vld [vmem:[#allocation5 + $0xd0] sm:$0xff]  ;;  %p1015_p0 = pnand %p1014_p13, %p1008_p10 }
  0x3f   :  { %818 = vmatprep.subr.bf16.mxu0 %v1040_v0  ;;  %v157_v38 = vld [vmem:[#allocation5 + $0xd8] sm:$0xff]  ;;  %v831_v39 = vpack.c.bf16 %v66_v35, %v65_v34  ;;  %v67_v40 = vld [vmem:[#allocation5 + $0x70] sm:$0xff]  ;;  %v158_v43 = vld [vmem:[#allocation5 + $0xe0] sm:$0xff] }
  0x40   :  { %841 = vmatpush3.bf16.msra.mxu1 %v840_v18  ;;  %v68_v41 = vld [vmem:[#allocation5 + $0x78] sm:$0xff]  ;;  %v852_v42 = vpack.c.bf16 %v157_v38, %v156_v37  ;;  %v159_v44 = vld [vmem:[#allocation5 + $0xe8] sm:$0xff]  ;;  %v160_v48 = vld [vmem:[#allocation5 + $0xf0] sm:$0xff] }
  0x41   :  { %842 = vmatprep.subr.bf16.mxu1 %v1040_v0  ;;  %v834_v45 = vpack.c.bf16 %v68_v41, %v67_v40  ;;  %v855_v46 = vpack.c.bf16 %v159_v44, %v158_v43  ;;  %v52_v47 = vld [vmem:[#allocation2] sm:$0xff]  ;;  %v239_v51 = vld [vmem:[#allocation5 + $0x100] sm:$0xff]  ;;  %v240_v52 = vld [vmem:[#allocation5 + $0x108] sm:$0xff] }
  0x42   :  { %820 = vmatpush3.bf16.msra.mxu0 %v819_v14  ;;  %v161_v49 = vld [vmem:[#allocation5 + $0xf8] sm:$0xff]  ;;  %v241_v53 = vld [vmem:[#allocation5 + $0x110] sm:$0xff]  ;;  %v861_v54 = vpack.c.bf16 %v240_v52, %v239_v51  ;;  %v243_v57 = vld [vmem:[#allocation5 + $0x120] sm:$0xff] }
  0x43   :  { %821 = vmatprep.subr.bf16.mxu0 %v1040_v0  ;;  %v858_v50 = vpack.c.bf16 %v161_v49, %v160_v48  ;;  %v242_v55 = vld [vmem:[#allocation5 + $0x118] sm:$0xff]  ;;  %v244_v58 = vld [vmem:[#allocation5 + $0x128] sm:$0xff]  ;;  %v245_v60 = vld [vmem:[#allocation5 + $0x130] sm:$0xff] }
  0x44   :  { %844 = vmatpush3.bf16.msra.mxu1 %v843_v24  ;;  %v864_v56 = vpack.c.bf16 %v242_v55, %v241_v53  ;;  %v867_v59 = vpack.c.bf16 %v244_v58, %v243_v57  ;;  %v246_v61 = vld [vmem:[#allocation5 + $0x138] sm:$0xff]  ;;  %v247_v63 = vld [vmem:[#allocation5 + $0x140] sm:$0xff]  ;;  %v248_v2 = vld [vmem:[#allocation5 + $0x148] sm:$0xff] }
  0x45   :  { %845 = vmatprep.subr.bf16.mxu1 %v1040_v0  ;;  %v870_v62 = vpack.c.bf16 %v246_v61, %v245_v60  ;;  %v873_v3 = vpack.c.bf16 %v248_v2, %v247_v63  ;;  %v249_v4 = vld [vmem:[#allocation5 + $0x150] sm:$0xff]  ;;  %v250_v5 = vld [vmem:[#allocation5 + $0x158] sm:$0xff]  ;;  %v251_v7 = vld [vmem:[#allocation5 + $0x160] sm:$0xff] }
  0x46   :  { %823 = vmatpush3.bf16.msra.mxu0 %v822_v21  ;;  %v876_v6 = vpack.c.bf16 %v250_v5, %v249_v4  ;;  %v252_v8 = vld [vmem:[#allocation5 + $0x168] sm:$0xff]  ;;  %v547_v10 = vld [vmem:[#allocation7] ss:$0 sm:$0xff]  ;;  %v253_v15 = vld [vmem:[#allocation5 + $0x170] sm:$0xff] }
  0x47   :  { %824 = vmatprep.subr.bf16.mxu0 %v1040_v0  ;;  %v879_v9 = vpack.c.bf16 %v252_v8, %v251_v7  ;;  %v254_v16 = vld [vmem:[#allocation5 + $0x178] sm:$0xff]  ;;  %v332_v18 = vld [vmem:[#allocation5 + $0x180] sm:$0xff]  ;;  %v333_v19 = vld [vmem:[#allocation5 + $0x188] sm:$0xff] }
  0x48   :  { %847 = vmatpush3.bf16.msra.mxu1 %v846_v30  ;;  %v882_v17 = vpack.c.bf16 %v254_v16, %v253_v15  ;;  %v334_v20 = vld [vmem:[#allocation5 + $0x190] sm:$0xff]  ;;  %v885_v21 = vpack.c.bf16 %v333_v19, %v332_v18  ;;  %v335_v22 = vld [vmem:[#allocation5 + $0x198] sm:$0xff]  ;;  %v336_v24 = vld [vmem:[#allocation5 + $0x1a0] sm:$0xff]  ;;  %v516_v18 = vlaneseq }
  0x49   :  { %848 = vmatprep.subr.bf16.mxu1 %v1040_v0  ;;  %v888_v23 = vpack.c.bf16 %v335_v22, %v334_v20  ;;  %v337_v25 = vld [vmem:[#allocation5 + $0x1a8] sm:$0xff]  ;;  %v339_v28 = vld [vmem:[#allocation5 + $0x1b8] sm:$0xff]  ;;  %v340_v30 = vld [vmem:[#allocation5 + $0x1c0] sm:$0xff] }
  0x4a   :  { %826 = vmatpush3.bf16.msra.mxu0 %v825_v27  ;;  %v891_v26 = vpack.c.bf16 %v337_v25, %v336_v24  ;;  %v338_v27 = vld [vmem:[#allocation5 + $0x1b0] sm:$0xff]  ;;  %v341_v31 = vld [vmem:[#allocation5 + $0x1c8] sm:$0xff]  ;;  %v343_v34 = vld [vmem:[#allocation5 + $0x1d8] sm:$0xff]  ;;  %v517_v19 = vand.u32 127, %v516_v18 }
  0x4b   :  { %827 = vmatprep.subr.bf16.mxu0 %v1040_v0  ;;  %v894_v29 = vpack.c.bf16 %v339_v28, %v338_v27  ;;  %v897_v32 = vpack.c.bf16 %v341_v31, %v340_v30  ;;  %v345_v37 = vld [vmem:[#allocation5 + $0x1e8] sm:$0xff]  ;;  %v346_v44 = vld [vmem:[#allocation5 + $0x1f0] sm:$0xff]  ;;  %v428_v51 = vld [vmem:[#allocation5 + $0x218] sm:$0xff] }
  0x4c   :  { %850 = vmatpush3.bf16.msra.mxu1 %v849_v36  ;;  %v344_v36 = vld [vmem:[#allocation5 + $0x1e0] sm:$0xff]  ;;  %v426_v48 = vld [vmem:[#allocation5 + $0x208] sm:$0xff]  ;;  %v427_v49 = vld [vmem:[#allocation5 + $0x210] sm:$0xff]  ;;  %vm518_vm1 = vcmp.lt.s32.totalorder %v517_v19, 8  ;;  %vm522_vm2 = vcmp.eq.s32.totalorder %v517_v19, 8 }
  0x4d   :  { %851 = vmatprep.subr.bf16.mxu1 %v1040_v0  ;;  %v903_v38 = vpack.c.bf16 %v345_v37, %v344_v36  ;;  %v912_v52 = vpack.c.bf16 %v428_v51, %v427_v49  ;;  %v429_v53 = vld [vmem:[#allocation5 + $0x220] sm:$0xff]  ;;  %v435_v61 = vld [vmem:[#allocation5 + $0x250] sm:$0xff] }
  0x4e   :  { %829 = vmatpush3.bf16.msra.mxu0 %v828_v33  ;;  %v342_v33 = vld [vmem:[#allocation5 + $0x1d0] sm:$0xff]  ;;  %v433_v58 = vld [vmem:[#allocation5 + $0x240] sm:$0xff] }
  0x4f   :  { %830 = vmatprep.subr.bf16.mxu0 %v1040_v0  ;;  %v900_v35 = vpack.c.bf16 %v343_v34, %v342_v33  ;;  %v437_v2 = vld [vmem:[#allocation5 + $0x260] sm:$0xff] }
  0x50   :  { %853 = vmatpush3.bf16.msra.mxu1 %v852_v42  ;;  %v549_v5 = vld [vmem:[#allocation7 + $0x2] ss:$0 sm:$0xff]  ;;  %v551_v20 = vld [vmem:[#allocation7 + $0x4] ss:$0 sm:$0xff] }
  0x51   :  { %854 = vmatprep.subr.bf16.mxu1 %v1040_v0 }
  0x52   :  { %832 = vmatpush3.bf16.msra.mxu0 %v831_v39  ;;  %v548_v39 = vld [vmem:[#allocation7 + $0x1] ss:$0 sm:$0xff] }
  0x53   :  { %833 = vmatprep.subr.bf16.mxu0 %v1040_v0 }
  0x54   :  { %856 = vmatpush3.bf16.msra.mxu1 %v855_v46 }
  0x55   :  { %857 = vmatprep.subr.bf16.mxu1 %v1040_v0 }
  0x56   :  { %835 = vmatpush3.bf16.msra.mxu0 %v834_v45  ;;  %v347_v45 = vld [vmem:[#allocation5 + $0x1f8] sm:$0xff] }
  0x57   :  { %860 = vmatprep.subr.bf16.mxu0 %v1040_v0  ;;  %v906_v46 = vpack.c.bf16 %v347_v45, %v346_v44 }
  0x58   :  { %859 = vmatpush3.bf16.msra.mxu1 %v858_v50 }
  0x59   :  { %670 = vmatmul.mubr.f32.vlgmr.msra.gmra.mrb[0].mxu0 %v52_v47  ;;  %884 = vmatprep.subr.bf16.mxu1 %v1040_v0  ;;  %v425_v47 = vld [vmem:[#allocation5 + $0x200] sm:$0xff] }
  0x5a   :  { %739 = vmatprep.mubr.msk.f32.mxu0 %vm1041_vm0, %v1042_v1  ;;  %862 = vmatpush3.bf16.msra.mxu0 %v861_v54  ;;  %v909_v50 = vpack.c.bf16 %v426_v48, %v425_v47  ;;  %v430_v54 = vld [vmem:[#allocation5 + $0x228] sm:$0xff] }
  0x5b   :  { %863 = vmatprep.subr.bf16.mxu0 %v1040_v0  ;;  %v915_v55 = vpack.c.bf16 %v430_v54, %v429_v53 }
  0x5e   :  { %865 = vmatpush3.bf16.msra.mxu0 %v864_v56  ;;  %v432_v56 = vld [vmem:[#allocation5 + $0x238] sm:$0xff] }
  0x5f   :  { %866 = vmatprep.subr.bf16.mxu0 %v1040_v0 }
  0x62   :  { %868 = vmatpush3.bf16.msra.mxu0 %v867_v59  ;;  %v434_v59 = vld [vmem:[#allocation5 + $0x248] sm:$0xff] }
  0x63   :  { %869 = vmatprep.subr.bf16.mxu0 %v1040_v0  ;;  %v921_v60 = vpack.c.bf16 %v434_v59, %v433_v58 }
  0x66   :  { %871 = vmatpush3.bf16.msra.mxu0 %v870_v62  ;;  %v436_v62 = vld [vmem:[#allocation5 + $0x258] sm:$0xff] }
  0x67   :  { %872 = vmatprep.subr.bf16.mxu0 %v1040_v0  ;;  %v924_v63 = vpack.c.bf16 %v436_v62, %v435_v61 }
  0x6a   :  { %874 = vmatpush3.bf16.msra.mxu0 %v873_v3  ;;  %v438_v3 = vld [vmem:[#allocation5 + $0x268] sm:$0xff] }
  0x6b   :  { %875 = vmatprep.subr.bf16.mxu0 %v1040_v0  ;;  %v927_v4 = vpack.c.bf16 %v438_v3, %v437_v2 }
  0x6e   :  { %877 = vmatpush3.bf16.msra.mxu0 %v876_v6 }
  0x6f   :  { %878 = vmatprep.subr.bf16.mxu0 %v1040_v0 }
  0x72   :  { %880 = vmatpush3.bf16.msra.mxu0 %v879_v9 }
  0x73   :  { %881 = vmatprep.subr.bf16.mxu0 %v1040_v0 }
  0x76   :  { %883 = vmatpush3.bf16.msra.mxu0 %v882_v17 }
  0x77   :  { %908 = vmatprep.subr.bf16.mxu0 %v1040_v0 }
 0x12c   :  { %v140_v11 = vpop.f32.mrb[0].mxu0 }
 0x12d   :  { %v141_v12 = vadd.f32 %v547_v10, %v140_v11  ;;  %v671_v13 = vpop.f32.mrb[1].mxu0  ;;  %v439_v10 = vld [vmem:[#allocation5 + $0x270] sm:$0xff]  ;;  %v440_v11 = vld [vmem:[#allocation5 + $0x278] sm:$0xff] }
 0x12e   :  { %v550_v13 = vld [vmem:[#allocation7 + $0x3] ss:$0 sm:$0xff] }
 0x12f   :  { %v144_v14 = vmax.f32 %v141_v12, 0.0  ;;  %v930_v12 = vpack.c.bf16 %v440_v11, %v439_v10 }
 0x131   :  { %705 = vmatmul.mubr.f32.vlgmr.msra.gmra.mrb[0].mxu1 %v144_v14 }
 0x132   :  { %774 = vmatprep.mubr.msk.f32.mxu1 %vm1041_vm0, %v1042_v1  ;;  %886 = vmatpush3.bf16.msra.mxu1 %v885_v21 }
 0x133   :  { %887 = vmatprep.subr.bf16.mxu1 %v1040_v0 }
 0x136   :  { %889 = vmatpush3.bf16.msra.mxu1 %v888_v23 }
 0x137   :  { %890 = vmatprep.subr.bf16.mxu1 %v1040_v0 }
 0x13a   :  { %892 = vmatpush3.bf16.msra.mxu1 %v891_v26 }
 0x13b   :  { %893 = vmatprep.subr.bf16.mxu1 %v1040_v0 }
 0x13e   :  { %895 = vmatpush3.bf16.msra.mxu1 %v894_v29 }
 0x13f   :  { %896 = vmatprep.subr.bf16.mxu1 %v1040_v0 }
 0x142   :  { %898 = vmatpush3.bf16.msra.mxu1 %v897_v32 }
 0x143   :  { %899 = vmatprep.subr.bf16.mxu1 %v1040_v0 }
 0x146   :  { %901 = vmatpush3.bf16.msra.mxu1 %v900_v35 }
 0x147   :  { %902 = vmatprep.subr.bf16.mxu1 %v1040_v0 }
 0x14a   :  { %904 = vmatpush3.bf16.msra.mxu1 %v903_v38 }
 0x14b   :  { %905 = vmatprep.subr.bf16.mxu1 %v1040_v0 }
 0x14e   :  { %907 = vmatpush3.bf16.msra.mxu1 %v906_v46 }
 0x204   :  { %v233_v40 = vpop.f32.mrb[0].mxu1 }
 0x205   :  { %v234_v41 = vadd.f32 %v548_v39, %v233_v40  ;;  %v706_v42 = vpop.f32.mrb[1].mxu1 }
 0x207   :  { %v237_v43 = vmax.f32 %v234_v41, 0.0 }
 0x209   :  { %740 = vmatmul.mubr.f32.vlgmr.msra.gmra.mrb[2].mxu0 %v237_v43 }
 0x20a   :  { %809 = vmatprep.mubr.msk.f32.mxu0 %vm1041_vm0, %v1042_v1  ;;  %910 = vmatpush3.bf16.msra.mxu0 %v909_v50  ;;  %v431_v1 = vld [vmem:[#allocation5 + $0x230] sm:$0xff] }
 0x20b   :  { %911 = vmatprep.subr.bf16.mxu0 %v1040_v0  ;;  %v918_v57 = vpack.c.bf16 %v432_v56, %v431_v1 }
 0x20e   :  { %913 = vmatpush3.bf16.msra.mxu0 %v912_v52 }
 0x20f   :  { %914 = vmatprep.subr.bf16.mxu0 %v1040_v0 }
 0x212   :  { %916 = vmatpush3.bf16.msra.mxu0 %v915_v55 }
 0x213   :  { %917 = vmatprep.subr.bf16.mxu0 %v1040_v0 }
 0x216   :  { %919 = vmatpush3.bf16.msra.mxu0 %v918_v57 }
 0x217   :  { %920 = vmatprep.subr.bf16.mxu0 %v1040_v0 }
 0x21a   :  { %922 = vmatpush3.bf16.msra.mxu0 %v921_v60 }
 0x21b   :  { %923 = vmatprep.subr.bf16.mxu0 %v1040_v0 }
 0x21e   :  { %925 = vmatpush3.bf16.msra.mxu0 %v924_v63 }
 0x21f   :  { %926 = vmatprep.subr.bf16.mxu0 %v1040_v0 }
 0x222   :  { %928 = vmatpush3.bf16.msra.mxu0 %v927_v4 }
 0x223   :  { %929 = vmatprep.subr.bf16.mxu0 %v1040_v0 }
 0x226   :  { %931 = vmatpush3.bf16.msra.mxu0 %v930_v12 }
 0x2dc   :  { %v326_v6 = vpop.f32.mrb[2].mxu0 }
 0x2dd   :  { %v327_v7 = vadd.f32 %v549_v5, %v326_v6  ;;  %v741_v8 = vpop.f32.mrb[3].mxu0 }
 0x2df   :  { %v330_v9 = vmax.f32 %v327_v7, 0.0 }
 0x2e1   :  { %775 = vmatmul.mubr.f32.vlgmr.msra.gmra.mrb[2].mxu1 %v330_v9 }
 0x3b4   :  { %v419_v14 = vpop.f32.mrb[2].mxu1 }
 0x3b5   :  { %v420_v15 = vadd.f32 %v550_v13, %v419_v14  ;;  %v776_v16 = vpop.f32.mrb[3].mxu1 }
 0x3b7   :  { %v423_v17 = vmax.f32 %v420_v15, 0.0 }
 0x3b9   :  { %810 = vmatmul.mubr.f32.vlgmr.msra.gmra.mrb[4].mxu0 %v423_v17 }
 0x48c   :  { %v512_v0 = vpop.f32.mrb[4].mxu0 }
 0x48d   :  { %v513_v21 = vadd.f32 %v551_v20, %v512_v0  ;;  %v811_v22 = vpop.f32.mrb[5].mxu0 }
 0x48f   :  { %v519_v23 = vsel %vm518_vm1, %v513_v21, 0.0  ;;  %v523_v24 = vsel %vm522_vm2, %v513_v21, 0.0 }
 0x490   :  { %520 = vadd.xlane.f32.xlu0 %v519_v23 }
 0x494   :  { %524 = vadd.xlane.f32.xlu0 %v523_v24 }
 0x51d   :  { %v521_v25 = vpop.xlane.xlu0 %520 }
 0x51e   :  { %v527_v27 = vmul.f32 0.125, %v521_v25 }
 0x521   :  { %v525_v26 = vpop.xlane.xlu0 %524 }
 0x522   :  { %v526_v28 = vadd.f32 %v525_v26, %v513_v21 }
 0x524   :  { %v528_v29 = vsub.f32 %v526_v28, %v527_v27 }
 0x526   :  { %v529_v30 = vsel %vm518_vm1, %v528_v29, 0.0 }
 0x527   :  { %530 = vst [vmem:[#allocation8] sm:$0xff] %v529_v30 }
 0x528   :  { %1018 = shalt.err (!%p1015_p0)
}
 0x529   :  { %s1019_s25 = scalar_lea.hbm %s1167_s3, 128 }
 0x52a   :  { %p1020_p1 = scmp.ne.s32.totalorder %s1167_s3, %s1019_s25  ;;  %p1023_p2 = scmp.lt.u32.totalorder %s1019_s25, %s1167_s3 }
 0x52c   :  { %p1025_p3 = pnand %p1023_p2, %p1020_p1 }
 0x52e   :  { %1028 = shalt.err (!%p1025_p3)
}
 0x52f   :  { %540 = dma.vmem_to_hbm [thread:$0]  %s538_s21, 128, %s1167_s3, [#allocation4]  }
 0x530   :  { %1033 = dma.done.wait [#allocation4], 128  }
 0x531   :  { %1034 = vsyncadd [#allocation4], 4294967168 }
 0x532   :  { %544 = vsyncpa [#allocation3], 1 }
 0x533   :  { %545 = vsyncpa [#allocation6], 1 }
 0x534   :  { %546 = vsyncpa [#allocation4], 1 }

</bundles_post_ra>
